<compile_context>
chip_gen: v5e
topology: v5e:2x2
jax: 0.10.0
libtpu: 0.0.40
codegen_flags: <defaults>
</compile_context>

<pallas_src>
import functools

import jax
import jax.numpy as jnp
from jax import lax
from jax.experimental import pallas as pl
from jax.experimental.pallas import tpu as pltpu

CM = 16  # bottleneck channels, as in the PyTorch module


def _inception_kernel(x_ref, invc_ref, wstack_ref, w23_ref, out_ref,
                      *, c1, c2, c3, dilation, T):
    f32 = jnp.float32
    d = dilation
    P = 3 * d
    relu = lambda v: jnp.maximum(v, 0.0)

    X = x_ref[0]                                    # (inf, T + 6d), zeros in all pad columns

    # ---- ONE stacked 1x1 matmul: rows = [w1 | w2a | w3a | w4]
    H = jnp.dot(wstack_ref[...], X, preferred_element_type=f32)      # (c1+2*CM+c4, T+6d)

    y1 = relu(H[:c1, P:P + T])                      # branch1 output (relu'd), output-aligned
    h23 = relu(H[c1:c1 + 2 * CM])                   # [branch2; branch3] bottlenecks (relu'd)
    h4 = H[c1 + 2 * CM:]                            # branch4 pre-pool rows -- NO relu yet

    # ---- merged branch2 + branch3: one im2col matmul, K = 7 * 2*CM = 224
    a23 = jnp.concatenate([h23[:, t * d: t * d + T] for t in range(7)], axis=0)   # (224, T)
    y23 = relu(jnp.dot(w23_ref[...], a23, preferred_element_type=f32))            # (c2+c3, T)

    # ---- branch4: AvgPool1d(3,1,1,count_include_pad=False) fused after the 1x1 conv
    #      (per-column 1/count scaling commutes with the 1x1 conv, so pool h4 instead of x)
    s4 = h4[:, P - 1:P - 1 + T] + h4[:, P:P + T] + h4[:, P + 1:P + 1 + T]          # (c4, T)
    y4 = relu(s4 * invc_ref[...])                   # precomputed 1/count (zero in pad columns)

    # ---- direct lane-dense stores, same channel order as torch.cat((x1,x2,x3,x4),1)
    out_ref[0, :c1] = y1
    out_ref[0, c1:c1 + c2 + c3] = y23
    out_ref[0, c1 + c2 + c3:] = y4


def inception_single(x, w1, w2a, w2b, w3a, w3b, w4, *, dilation=2, samples_per_block=None):
    """x: (N, inf, L) f32.  w1/w2a/w3a/w4 are squeezed k=1 weights (out, in);
    w2b: (c2, CM, 5), w3b: (c3, CM, 7) in PyTorch (out, in, k) layout."""
    N, inf, L = x.shape
    c1, c2, c3, c4 = w1.shape[0], w2b.shape[0], w3b.shape[0], w4.shape[0]
    cout = c1 + c2 + c3 + c4
    d = dilation
    P = 3 * d                        # left pad per sample; the next sample's left pad (or the
    Ls = L + P                       # rounded-up zero tail) doubles as this sample's right pad

    if samples_per_block is None:
        target_lanes = 4096          # big tiles amortize the ~0.35us/step overhead (HBM-bound)
        nb = max(1, min(N, target_lanes // Ls))
        # keep >= 2 grid steps when each half still fills a lane tile (feeds both v7x TCs)
        if nb >= N and N >= 2 and N * Ls >= 2 * 128:
            nb = -(-N // 2)
        samples_per_block = nb
    NB = samples_per_block
    nblk = -(-N // NB)               # ceil(N / NB)
    Npad = nblk * NB

    T = -(-(NB * Ls) // 128) * 128   # lane-dense block width (multiple of 128)
    Tin = T + 6 * d                  # tap 6 of the k=7 dilated conv reaches 6d past column T-1

    # ---- layout plumbing (wrapper side): per-sample left pad, fold NB samples into lanes
    xp = jnp.pad(x, ((0, Npad - N), (0, 0), (P, 0)))                    # (Npad, inf, Ls)
    xb = xp.reshape(nblk, NB, inf, Ls).transpose(0, 2, 1, 3).reshape(nblk, inf, NB * Ls)
    X = jnp.pad(xb, ((0, 0), (0, 0), (0, Tin - NB * Ls)))               # (nblk, inf, Tin)

    # ---- single stacked 1x1 weight (branch4's w4 included; its relu happens after pooling)
    wstack = jnp.concatenate([w1, w2a, w3a, w4], axis=0)                # (c1+2*CM+c4, inf)

    # ---- merged branch2+3 im2col weight, tap-major over the stacked [h2; h3] rows
    w23 = jnp.zeros((c2 + c3, 7, 2 * CM), jnp.float32)
    w23 = w23.at[:c2, 1:6, :CM].set(jnp.transpose(w2b, (0, 2, 1)))      # k=5, pad=2d -> taps 1..5
    w23 = w23.at[c2:, :, CM:].set(jnp.transpose(w3b, (0, 2, 1)))        # k=7, pad=3d -> taps 0..6
    w23 = w23.reshape(c2 + c3, 7 * 2 * CM)

    # ---- 1/count for AvgPool1d(3,1,1,count_include_pad=False); zero in discarded pad columns
    jj = jnp.arange(Ls)
    if L == 1:
        per = jnp.where(jj == 0, 1.0, 0.0).astype(jnp.float32)
    else:
        per = jnp.where(jj >= L, 0.0,
                        jnp.where((jj == 0) | (jj == L - 1), 0.5, 1.0 / 3.0)).astype(jnp.float32)
    invc = jnp.pad(jnp.tile(per, NB), (0, T - NB * Ls))[None, :]        # (1, T)

    # ---- VMEM budget: live intermediates + double-buffered I/O blocks (all f32)
    rows_live = inf + (c1 + 2 * CM + c4) + 14 * CM + cout + (c2 + c3) + c4 + 2
    vmem_est = 4 * Tin * rows_live + 8 * cout * T + 8 * (inf + 1) * Tin
    vmem_limit = int(min(max(3 * vmem_est, 32 << 20), 48 << 20))

    kern = functools.partial(_inception_kernel, c1=c1, c2=c2, c3=c3, dilation=d, T=T)

    out_blk = pl.pallas_call(
        kern,
        out_shape=jax.ShapeDtypeStruct((nblk, cout, T), jnp.float32),
        grid_spec=pltpu.PrefetchScalarGridSpec(
            num_scalar_prefetch=0,
            grid=(nblk,),
            in_specs=[
                pl.BlockSpec((1, inf, Tin), lambda n: (n, 0, 0)),
                pl.BlockSpec((1, T), lambda n: (0, 0)),
                pl.BlockSpec(wstack.shape, lambda n: (0, 0)),
                pl.BlockSpec(w23.shape, lambda n: (0, 0)),
            ],
            out_specs=pl.BlockSpec((1, cout, T), lambda n: (n, 0, 0)),
        ),
        compiler_params=pltpu.CompilerParams(
            dimension_semantics=("parallel",),
            vmem_limit_bytes=vmem_limit),
    )(X, invc, wstack, w23)

    # ---- undo layout plumbing: (nblk, cout, T) -> (N, cout, L)
    out = out_blk[:, :, :NB * Ls].reshape(nblk, cout, NB, Ls)
    out = out.transpose(0, 2, 1, 3).reshape(Npad, cout, Ls)[:N, :, :L]
    return out


# ---------------- plain-JAX reference (for correctness check) ----------------
def _conv1d(x, w, pad, dil):
    return lax.conv_general_dilated(
        x, w, window_strides=(1,), padding=[(pad, pad)], rhs_dilation=(dil,),
        dimension_numbers=("NCH", "OIH", "NCH"))


def reference(x, w1, w2a, w2b, w3a, w3b, w4, dilation):
    relu = lambda v: jnp.maximum(v, 0.0)
    y1 = relu(_conv1d(x, w1[:, :, None], 0, dilation))
    h2 = relu(_conv1d(x, w2a[:, :, None], 0, dilation))
    y2 = relu(_conv1d(h2, w2b, 2 * dilation, dilation))
    h3 = relu(_conv1d(x, w3a[:, :, None], 0, dilation))
    y3 = relu(_conv1d(h3, w3b, 3 * dilation, dilation))
    L = x.shape[-1]
    xp = jnp.pad(x, ((0, 0), (0, 0), (1, 1)))
    s = xp[:, :, :-2] + xp[:, :, 1:-1] + xp[:, :, 2:]
    i = jnp.arange(L)
    counts = jnp.where((i == 0) | (i == L - 1), 2.0, 3.0)
    pooled = s / counts
    y4 = relu(_conv1d(pooled, w4[:, :, None], 0, dilation))
    return jnp.concatenate([y1, y2, y3, y4], axis=1)


if __name__ == "__main__":
    N, INF, L = 2, 4, 16
    C1, C2, C3, C4 = 8, 8, 8, 8
    DIL = 2

    key = jax.random.PRNGKey(0)
    ks = jax.random.split(key, 7)
    x = jax.random.normal(ks[0], (N, INF, L), jnp.float32)
    # Conv1d weights, PyTorch layout (out, in, k); bias=False in the module.
    w1 = 0.1 * jax.random.normal(ks[1], (C1, INF), jnp.float32)        # k=1 squeezed
    w2a = 0.1 * jax.random.normal(ks[2], (CM, INF), jnp.float32)       # k=1 squeezed
    w2b = 0.1 * jax.random.normal(ks[3], (C2, CM, 5), jnp.float32)
    w3a = 0.1 * jax.random.normal(ks[4], (CM, INF), jnp.float32)       # k=1 squeezed
    w3b = 0.1 * jax.random.normal(ks[5], (C3, CM, 7), jnp.float32)
    w4 = 0.1 * jax.random.normal(ks[6], (C4, INF), jnp.float32)        # k=1 squeezed

    out = inception_single(x, w1, w2a, w2b, w3a, w3b, w4, dilation=DIL)
    out = jax.block_until_ready(out)

    ref = reference(x, w1, w2a, w2b, w3a, w3b, w4, DIL)
    assert out.shape == (N, C1 + C2 + C3 + C4, L), out.shape
    assert jnp.allclose(out, ref, atol=2e-3, rtol=2e-3), float(jnp.max(jnp.abs(out - ref)))

    print("KERNEL_OK")
</pallas_src>

<mosaic_0001>
module attributes {stable_mosaic.version = 11 : i64} {
  func.func @_inception_kernel(%arg0: i32, %arg1: memref<1x4x140xf32, #tpu.memory_space<vmem>>, %arg2: memref<1x128xf32, #tpu.memory_space<vmem>>, %arg3: memref<48x4xf32, #tpu.memory_space<vmem>>, %arg4: memref<16x224xf32, #tpu.memory_space<vmem>>, %arg5: memref<1x32x128xf32, #tpu.memory_space<vmem>>) attributes {dimension_semantics = [#tpu.dimension_semantics<parallel>], iteration_bounds = array<i64: 1>, scalar_prefetch = 0 : i64, scratch_operands = 0 : i64, tpu.core_type = #tpu.core_type<tc>, window_params = [{transform_indices = @transform_0, window_bounds = array<i64: 1, 4, 140>}, {pipeline_mode = #tpu.pipeline_mode<synchronous>, transform_indices = @transform_1, window_bounds = array<i64: 1, 128>}, {pipeline_mode = #tpu.pipeline_mode<synchronous>, transform_indices = @transform_2, window_bounds = array<i64: 48, 4>}, {pipeline_mode = #tpu.pipeline_mode<synchronous>, transform_indices = @transform_3, window_bounds = array<i64: 16, 224>}, {transform_indices = @transform_4, window_bounds = array<i64: 1, 32, 128>}]} {
    %c0 = arith.constant 0 : index
    %c0_0 = arith.constant 0 : index
    %c0_1 = arith.constant 0 : index
    %0 = vector.load %arg1[%c0, %c0_0, %c0_1] : memref<1x4x140xf32, #tpu.memory_space<vmem>>, vector<1x4x140xf32>
    %1 = vector.shape_cast %0 : vector<1x4x140xf32> to vector<4x140xf32>
    %c0_2 = arith.constant 0 : index
    %c0_3 = arith.constant 0 : index
    %2 = vector.load %arg3[%c0_2, %c0_3] : memref<48x4xf32, #tpu.memory_space<vmem>>, vector<48x4xf32>
    %cst = arith.constant dense<0.000000e+00> : vector<48x140xf32>
    %3 = tpu.matmul %2, %1, %cst {dimension_numbers = #tpu.dot_dimension_numbers<[1], [0], [0], [1], [0, 0, 1, 1], [], []>} : vector<48x4xf32>, vector<4x140xf32>, vector<48x140xf32> -> vector<48x140xf32>
    %4 = vector.extract_strided_slice %3 {offsets = [0, 6], sizes = [8, 128], strides = [1, 1]} : vector<48x140xf32> to vector<8x128xf32>
    %cst_4 = arith.constant 0.000000e+00 : f32
    %5 = vector.broadcast %cst_4 : f32 to vector<8x128xf32>
    %6 = arith.maximumf %4, %5 : vector<8x128xf32>
    %7 = vector.extract_strided_slice %3 {offsets = [8, 0], sizes = [32, 140], strides = [1, 1]} : vector<48x140xf32> to vector<32x140xf32>
    %cst_5 = arith.constant 0.000000e+00 : f32
    %8 = vector.broadcast %cst_5 : f32 to vector<32x140xf32>
    %9 = arith.maximumf %7, %8 : vector<32x140xf32>
    %10 = vector.extract_strided_slice %3 {offsets = [40, 0], sizes = [8, 140], strides = [1, 1]} : vector<48x140xf32> to vector<8x140xf32>
    %11 = vector.extract_strided_slice %9 {offsets = [0, 0], sizes = [32, 128], strides = [1, 1]} : vector<32x140xf32> to vector<32x128xf32>
    %12 = vector.extract_strided_slice %9 {offsets = [0, 2], sizes = [32, 128], strides = [1, 1]} : vector<32x140xf32> to vector<32x128xf32>
    %13 = vector.extract_strided_slice %9 {offsets = [0, 4], sizes = [32, 128], strides = [1, 1]} : vector<32x140xf32> to vector<32x128xf32>
    %14 = vector.extract_strided_slice %9 {offsets = [0, 6], sizes = [32, 128], strides = [1, 1]} : vector<32x140xf32> to vector<32x128xf32>
    %15 = vector.extract_strided_slice %9 {offsets = [0, 8], sizes = [32, 128], strides = [1, 1]} : vector<32x140xf32> to vector<32x128xf32>
    %16 = vector.extract_strided_slice %9 {offsets = [0, 10], sizes = [32, 128], strides = [1, 1]} : vector<32x140xf32> to vector<32x128xf32>
    %17 = vector.extract_strided_slice %9 {offsets = [0, 12], sizes = [32, 128], strides = [1, 1]} : vector<32x140xf32> to vector<32x128xf32>
    %18 = tpu.concatenate %11, %12, %13, %14, %15, %16, %17 in 0 : vector<32x128xf32>, vector<32x128xf32>, vector<32x128xf32>, vector<32x128xf32>, vector<32x128xf32>, vector<32x128xf32>, vector<32x128xf32> -> vector<224x128xf32>
    %c0_6 = arith.constant 0 : index
    %c0_7 = arith.constant 0 : index
    %19 = vector.load %arg4[%c0_6, %c0_7] : memref<16x224xf32, #tpu.memory_space<vmem>>, vector<16x224xf32>
    %cst_8 = arith.constant dense<0.000000e+00> : vector<16x128xf32>
    %20 = tpu.matmul %19, %18, %cst_8 {dimension_numbers = #tpu.dot_dimension_numbers<[1], [0], [0], [1], [0, 0, 1, 1], [], []>} : vector<16x224xf32>, vector<224x128xf32>, vector<16x128xf32> -> vector<16x128xf32>
    %cst_9 = arith.constant 0.000000e+00 : f32
    %21 = vector.broadcast %cst_9 : f32 to vector<16x128xf32>
    %22 = arith.maximumf %20, %21 : vector<16x128xf32>
    %23 = vector.extract_strided_slice %10 {offsets = [0, 5], sizes = [8, 128], strides = [1, 1]} : vector<8x140xf32> to vector<8x128xf32>
    %24 = vector.extract_strided_slice %10 {offsets = [0, 6], sizes = [8, 128], strides = [1, 1]} : vector<8x140xf32> to vector<8x128xf32>
    %25 = arith.addf %23, %24 : vector<8x128xf32>
    %26 = vector.extract_strided_slice %10 {offsets = [0, 7], sizes = [8, 128], strides = [1, 1]} : vector<8x140xf32> to vector<8x128xf32>
    %27 = arith.addf %25, %26 : vector<8x128xf32>
    %c0_10 = arith.constant 0 : index
    %c0_11 = arith.constant 0 : index
    %28 = vector.load %arg2[%c0_10, %c0_11] : memref<1x128xf32, #tpu.memory_space<vmem>>, vector<1x128xf32>
    %29 = vector.broadcast %28 : vector<1x128xf32> to vector<8x128xf32>
    %30 = arith.mulf %27, %29 : vector<8x128xf32>
    %cst_12 = arith.constant 0.000000e+00 : f32
    %31 = vector.broadcast %cst_12 : f32 to vector<8x128xf32>
    %32 = arith.maximumf %30, %31 : vector<8x128xf32>
    %c0_13 = arith.constant 0 : index
    %c0_14 = arith.constant 0 : index
    %c0_15 = arith.constant 0 : index
    %33 = vector.load %arg5[%c0_13, %c0_14, %c0_15] : memref<1x32x128xf32, #tpu.memory_space<vmem>>, vector<1x8x128xf32>
    %34 = vector.shape_cast %33 : vector<1x8x128xf32> to vector<8x128xf32>
    %35 = vector.shape_cast %6 : vector<8x128xf32> to vector<1x8x128xf32>
    tpu.vector_store %arg5[%c0_13, %c0_14, %c0_15], %35 {strides = array<i32>} : memref<1x32x128xf32, #tpu.memory_space<vmem>>, vector<1x8x128xf32>,
    %c0_16 = arith.constant 0 : index
    %c8 = arith.constant 8 : index
    %c0_17 = arith.constant 0 : index
    %36 = vector.load %arg5[%c0_16, %c8, %c0_17] : memref<1x32x128xf32, #tpu.memory_space<vmem>>, vector<1x16x128xf32>
    %37 = vector.shape_cast %36 : vector<1x16x128xf32> to vector<16x128xf32>
    %38 = vector.shape_cast %22 : vector<16x128xf32> to vector<1x16x128xf32>
    tpu.vector_store %arg5[%c0_16, %c8, %c0_17], %38 {strides = array<i32>} : memref<1x32x128xf32, #tpu.memory_space<vmem>>, vector<1x16x128xf32>,
    %c0_18 = arith.constant 0 : index
    %c24 = arith.constant 24 : index
    %c0_19 = arith.constant 0 : index
    %39 = vector.load %arg5[%c0_18, %c24, %c0_19] : memref<1x32x128xf32, #tpu.memory_space<vmem>>, vector<1x8x128xf32>
    %40 = vector.shape_cast %39 : vector<1x8x128xf32> to vector<8x128xf32>
    %41 = vector.shape_cast %32 : vector<8x128xf32> to vector<1x8x128xf32>
    tpu.vector_store %arg5[%c0_18, %c24, %c0_19], %41 {strides = array<i32>} : memref<1x32x128xf32, #tpu.memory_space<vmem>>, vector<1x8x128xf32>,
    return
  }
  func.func @transform_0(%arg0: i32) -> (i32, i32, i32) {
    %c0_i32 = arith.constant 0 : i32
    %c0_i32_0 = arith.constant 0 : i32
    %c0_i32_1 = arith.constant 0 : i32
    return %arg0, %c0_i32, %c0_i32_0 : i32, i32, i32
  }
  func.func @transform_1(%arg0: i32) -> (i32, i32) {
    %c0_i32 = arith.constant 0 : i32
    %c0_i32_0 = arith.constant 0 : i32
    %c0_i32_1 = arith.constant 0 : i32
    return %c0_i32, %c0_i32_0 : i32, i32
  }
  func.func @transform_2(%arg0: i32) -> (i32, i32) {
    %c0_i32 = arith.constant 0 : i32
    %c0_i32_0 = arith.constant 0 : i32
    %c0_i32_1 = arith.constant 0 : i32
    return %c0_i32, %c0_i32_0 : i32, i32
  }
  func.func @transform_3(%arg0: i32) -> (i32, i32) {
    %c0_i32 = arith.constant 0 : i32
    %c0_i32_0 = arith.constant 0 : i32
    %c0_i32_1 = arith.constant 0 : i32
    return %c0_i32, %c0_i32_0 : i32, i32
  }
  func.func @transform_4(%arg0: i32) -> (i32, i32, i32) {
    %c0_i32 = arith.constant 0 : i32
    %c0_i32_0 = arith.constant 0 : i32
    %c0_i32_1 = arith.constant 0 : i32
    return %arg0, %c0_i32, %c0_i32_0 : i32, i32, i32
  }
}

</mosaic_0001>

<bundles_post_ra>
// kernel: tpu_custom_call.1
= control target key start
LH: loop header
LB: loop body
LE: loop exit
PB: predicated region body
PF: predicated region fallthrough
CT: control target
= control target key end

     0   :  { %s788_s0 = inlined_call_operand.vmem [shape: f32[1,4,140], index: 0, kind: input, shape index: {}]   ;;  %s789_s1 = inlined_call_operand.vmem [shape: f32[1,128], index: 1, kind: input, shape index: {}]   ;;  %s790_s2 = inlined_call_operand.vmem [shape: f32[48,4], index: 2, kind: input, shape index: {}]   ;;  %s791_s3 = inlined_call_operand.vmem [shape: f32[16,224], index: 3, kind: input, shape index: {}]   ;;  %s792_s4 = inlined_call_operand.hbm [shape: f32[1,32,128], index: 4, kind: output, shape index: {}]  }
   0x1   :  { %v18_v0 = vld [vmem:[%s788_s0] sm:$0xff] }
   0x2   :  { %26 = vst [vmem:[#allocation1] ss:$2 sm:$0xff] %v18_v0 }
   0x3   :  { %9 = vsyncpa [#allocation3], 0  ;;  %vm48_vm0 = vcmask 1043456   ;;  %v19_v1 = vld [vmem:[%s790_s2] sm:$0xff]  ;;  %vm29_vm1 = vcmask 31744   ;;  %v20_v4 = vld [vmem:[%s790_s2 + $0x8] sm:$0xff] }
   0x4   :  { %v21_v5 = vld [vmem:[%s790_s2 + $0x10] sm:$0xff]  ;;  %v22_v6 = vld [vmem:[%s790_s2 + $0x18] sm:$0xff]  ;;  %v23_v7 = vld [vmem:[%s790_s2 + $0x20] sm:$0xff]  ;;  %s595_s28 = smov 116   ;;  %s597_s29 = smov 124   ;;  %vm282_vm2 = vcmask 949248  }
   0x5   :  { %v24_v8 = vld [vmem:[%s790_s2 + $0x28] sm:$0xff]  ;;  %s596_s2 = smov 122   ;;  %s598_s30 = smov 126   ;;  %v568_v33 = vld [vmem:[%s789_s1] ss:$0 sm:$0xff]  ;;  %vm207_vm3 = vcmask 998400  }
   0x6   :  { %s599_s5 = smov 118   ;;  %s600_s6 = smov 120   ;;  %vm182_vm4 = vcmask 1014784   ;;  %vm257_vm5 = vcmask 965632   ;;  %vm157_vm6 = vcmask 1031168   ;;  %vm232_vm7 = vcmask 982016  }
   0x7   :  { %s601_s7 = smov 127   ;;  %s602_s10 = smov 5   ;;  %vm295_vm8 = vcmask 785408   ;;  %vm356_vm9 = vcmask 1039360   ;;  %vm398_vm10 = vcmask 1006592  }
   0x8   :  { %s603_s18 = smov 123   ;;  %s408_s21 = sshll.u32 %s792_s4, 4  ;;  %s409_s21 = int_to_ptr.hbm [resolvable:$true] %s408_s21 }
   0x9   :  { %v27_v2 = vld.sshfl [vmem:[#allocation1] sm:$0xff pattern:$0x75316420]  ;;  %v28_v3 = vld.sshfl [vmem:[#allocation1 + $0x8] sm:$0xff pattern:$0x75316420] }
   0xa   :  { %420 = vmatpush.msk.msra.mxu0 %vm48_vm0, %v27_v2  ;;  %427 = vmatpush.msk.msra.mxu1 %vm48_vm0, %v28_v3  ;;  %s605_s22 = smov 128   ;;  %s606_s23 = smov 8  }
   0xb   :  { %421 = vmatmul.msk.f32.vlgmr.msra.gmra.mxu0 %vm29_vm1, %v19_v1  ;;  %428 = vmatmul.msk.f32.vlgmr.msra.gmra.mxu1 %vm29_vm1, %v19_v1 }
  0x13   :  { %422 = vmatmul.msk.f32.gmra.mxu0 %vm29_vm1, %v20_v4  ;;  %429 = vmatmul.msk.f32.gmra.mxu1 %vm29_vm1, %v20_v4 }
  0x1b   :  { %423 = vmatmul.msk.f32.gmra.mxu0 %vm29_vm1, %v21_v5  ;;  %430 = vmatmul.msk.f32.gmra.mxu1 %vm29_vm1, %v21_v5 }
  0x23   :  { %424 = vmatmul.msk.f32.gmra.mxu0 %vm29_vm1, %v22_v6  ;;  %431 = vmatmul.msk.f32.gmra.mxu1 %vm29_vm1, %v22_v6 }
  0x2b   :  { %425 = vmatmul.msk.f32.gmra.mxu0 %vm29_vm1, %v23_v7  ;;  %432 = vmatmul.msk.f32.gmra.mxu1 %vm29_vm1, %v23_v7 }
  0x33   :  { %426 = vmatmul.msk.f32.gmra.mxu0 %vm29_vm1, %v24_v8  ;;  %433 = vmatmul.msk.f32.gmra.mxu1 %vm29_vm1, %v24_v8 }
  0x88   :  { %v70_v9 = vpop.f32.mrf.mxu0  ;;  %v665_v10 = vpop.f32.mrf.mxu1 }
  0x89   :  { %v123_v34 = vmax.f32 %v70_v9, 0.0  ;;  %v124_v35 = vmax.f32 %v665_v10, 0.0 }
  0x90   :  { %v667_v11 = vpop.f32.mrf.mxu0  ;;  %v108_v12 = vpop.f32.mrf.mxu1 }
  0x91   :  { %v125_v13 = vmax.f32 %v667_v11, 0.0  ;;  %v126_v14 = vmax.f32 %v108_v12, 0.0  ;;  %v293_v11 = vld [vmem:[%s791_s3 + $0x10] sm:$0xff] }
  0x93   :  { %v458_v15 = vpack.i.bf16 %v126_v14, %v125_v13 }
  0x95   :  { %459 = vrot.lane.b32.xlu2 %v458_v15, %s595_s28  ;;  %449 = vrot.lane.b32.xlu1 %v458_v15, %s596_s2 }
  0x98   :  { %v674_v16 = vpop.f32.mrf.mxu0  ;;  %v111_v17 = vpop.f32.mrf.mxu1 }
  0x99   :  { %v127_v18 = vmax.f32 %v674_v16, 0.0  ;;  %v128_v19 = vmax.f32 %v111_v17, 0.0  ;;  %v292_v16 = vld [vmem:[%s791_s3 + $0x8] sm:$0xff] }
  0x9b   :  { %v473_v20 = vpack.i.bf16 %v128_v19, %v127_v18 }
  0x9d   :  { %454 = vrot.lane.b32.xlu1 %v458_v15, %s597_s29  ;;  %474 = vrot.lane.b32.xlu0 %v473_v20, %s595_s28 }
  0x9e   :  { %469 = vrot.lane.b32.xlu2 %v473_v20, %s597_s29 }
  0xa0   :  { %v680_v21 = vpop.f32.mrf.mxu0  ;;  %v114_v22 = vpop.f32.mrf.mxu1 }
  0xa1   :  { %v129_v23 = vmax.f32 %v680_v21, 0.0  ;;  %v130_v24 = vmax.f32 %v114_v22, 0.0 }
  0xa3   :  { %v493_v25 = vpack.i.bf16 %v130_v24, %v129_v23 }
  0xa5   :  { %464 = vrot.lane.b32.xlu1 %v473_v20, %s596_s2  ;;  %479 = vrot.lane.b32.xlu0 %v493_v25, %s596_s2 }
  0xa6   :  { %494 = vrot.lane.b32.xlu2 %v493_v25, %s598_s30 }
  0xa8   :  { %v688_v26 = vpop.f32.mrf.mxu0  ;;  %v117_v27 = vpop.f32.mrf.mxu1 }
  0xa9   :  { %v131_v28 = vmax.f32 %v688_v26, 0.0  ;;  %v132_v29 = vmax.f32 %v117_v27, 0.0 }
  0xab   :  { %v513_v30 = vpack.i.bf16 %v132_v29, %v131_v28 }
  0xad   :  { %489 = vrot.lane.b32.xlu1 %v493_v25, %s595_s28  ;;  %484 = vrot.lane.b32.xlu0 %v493_v25, %s597_s29 }
  0xae   :  { %514 = vrot.lane.b32.xlu2 %v513_v30, %s597_s29 }
  0xb0   :  { %v699_v31 = vpop.f32.mrf.mxu1  ;;  %v701_v32 = vpop.f32.mrf.mxu0 }
  0xb5   :  { %509 = vrot.lane.b32.xlu1 %v473_v20, %s598_s30  ;;  %499 = vrot.lane.b32.xlu0 %v513_v30, %s596_s2 }
  0xb6   :  { %519 = vrot.lane.b32.xlu2 %v513_v30, %s595_s28 }
  0xbd   :  { %539 = vrot.lane.b32.xlu1 %v513_v30, %s599_s5  ;;  %504 = vrot.lane.b32.xlu0 %v493_v25, %s599_s5 }
  0xbe   :  { %524 = vrot.lane.b32.xlu2 %v473_v20, %s599_s5 }
  0xc5   :  { %544 = vrot.lane.b32.xlu1 %v458_v15, %s599_s5  ;;  %529 = vrot.lane.b32.xlu0 %v513_v30, %s598_s30 }
  0xc6   :  { %559 = vrot.lane.b32.xlu2 %v513_v30, %s600_s6 }
  0xcd   :  { %554 = vrot.lane.b32.xlu1 %v473_v20, %s600_s6  ;;  %534 = vrot.lane.b32.xlu0 %v458_v15, %s598_s30 }
  0xce   :  { %564 = vrot.lane.b32.xlu2 %v458_v15, %s600_s6 }
  0xd5   :  { %354 = vrot.lane.b32.xlu1 %v699_v31, %s601_s7  ;;  %549 = vrot.lane.b32.xlu0 %v493_v25, %s600_s6 }
  0xd6   :  { %362 = vrot.lane.b32.xlu2 %v701_v32, %s598_s30 }
  0xdd   :  { %352 = vrot.lane.b32.xlu0 %v701_v32, %s601_s7  ;;  %374 = vrot.lane.b32.xlu1 %v568_v33, %s602_s10 }
  0xde   :  { %383 = vrot.lane.b32.xlu2 %v123_v34, %s596_s2 }
  0xe5   :  { %364 = vrot.lane.b32.xlu0 %v699_v31, %s598_s30 }
  0xed   :  { %385 = vrot.lane.b32.xlu0 %v124_v35, %s596_s2 }
  0xef   :  { %v460_v36 = vpop.permute.xlu2 %459 }
  0xf0   :  { %v462_v55 = vunpack.i.h.bf16 %v460_v36  ;;  %v461_v56 = vunpack.i.l.bf16 %v460_v36 }
  0xf2   :  { %v283_v59 = vsel %vm282_vm2, %v461_v56, %v462_v55 }
  0xf8   :  { %v715_v37 = vpop.permute.xlu2 %469 }
  0xf9   :  { %v472_v29 = vunpack.i.h.bf16 %v715_v37  ;;  %v471_v30 = vunpack.i.l.bf16 %v715_v37 }
 0x100   :  { %v717_v38 = vpop.permute.xlu2 %494 }
 0x107   :  { %v450_v39 = vpop.permute.xlu1 %449 }
 0x108   :  { %v719_v40 = vpop.permute.xlu2 %514  ;;  %v452_v6 = vunpack.i.h.bf16 %v450_v39  ;;  %v451_v7 = vunpack.i.l.bf16 %v450_v39 }
 0x109   :  { %v517_v9 = vunpack.i.h.bf16 %v719_v40  ;;  %v516_v10 = vunpack.i.l.bf16 %v719_v40 }
 0x10a   :  { %v208_v20 = vsel %vm207_vm3, %v451_v7, %v452_v6 }
 0x10b   :  { %v186_v35 = vsel %vm182_vm4, %v516_v10, %v517_v9  ;;  %v291_v9 = vld [vmem:[%s791_s3] sm:$0xff] }
 0x10f   :  { %v721_v41 = vpop.permute.xlu1 %454  ;;  %v475_v42 = vpop.permute.xlu0 %474 }
 0x110   :  { %v520_v43 = vpop.permute.xlu2 %519  ;;  %v477_v51 = vunpack.i.h.bf16 %v475_v42  ;;  %v476_v52 = vunpack.i.l.bf16 %v475_v42  ;;  %v457_v39 = vunpack.i.h.bf16 %v721_v41  ;;  %v456_v40 = vunpack.i.l.bf16 %v721_v41 }
 0x111   :  { %v522_v44 = vunpack.i.h.bf16 %v520_v43  ;;  %v521_v45 = vunpack.i.l.bf16 %v520_v43 }
 0x112   :  { %v284_v58 = vsel %vm282_vm2, %v476_v52, %v477_v51  ;;  %v183_v51 = vsel %vm182_vm4, %v456_v40, %v457_v39 }
 0x113   :  { %v286_v46 = vsel %vm282_vm2, %v521_v45, %v522_v44  ;;  %v497_v44 = vunpack.i.h.bf16 %v717_v38  ;;  %v184_v45 = vsel %vm182_vm4, %v471_v30, %v472_v29 }
 0x114   :  { %329 = vmatpush.msra.mxu3 %v286_v46 }
 0x117   :  { %v465_v47 = vpop.permute.xlu1 %464  ;;  %v480_v48 = vpop.permute.xlu0 %479 }
 0x118   :  { %v482_v62 = vunpack.i.h.bf16 %v480_v48  ;;  %v481_v63 = vunpack.i.l.bf16 %v480_v48  ;;  %v467_v2 = vunpack.i.h.bf16 %v465_v47  ;;  %v466_v3 = vunpack.i.l.bf16 %v465_v47  ;;  %v525_v4 = vpop.permute.xlu2 %524 }
 0x119   :  { %v527_v33 = vunpack.i.h.bf16 %v525_v4  ;;  %v526_v34 = vunpack.i.l.bf16 %v525_v4  ;;  %v496_v47 = vunpack.i.l.bf16 %v717_v38 }
 0x11a   :  { %v210_v8 = vsel %vm207_vm3, %v481_v63, %v482_v62  ;;  %v209_v12 = vsel %vm207_vm3, %v466_v3, %v467_v2 }
 0x11b   :  { %v259_v46 = vsel %vm257_vm5, %v526_v34, %v527_v33 }
 0x11f   :  { %v490_v49 = vpop.permute.xlu1 %489  ;;  %v485_v50 = vpop.permute.xlu0 %484 }
 0x120   :  { %v492_v53 = vunpack.i.h.bf16 %v490_v49  ;;  %v491_v54 = vunpack.i.l.bf16 %v490_v49  ;;  %v487_v14 = vunpack.i.h.bf16 %v485_v50  ;;  %v486_v15 = vunpack.i.l.bf16 %v485_v50  ;;  %v560_v42 = vpop.permute.xlu2 %559 }
 0x121   :  { %v562_v48 = vunpack.i.h.bf16 %v560_v42  ;;  %v561_v49 = vunpack.i.l.bf16 %v560_v42 }
 0x122   :  { %v285_v57 = vsel %vm282_vm2, %v491_v54, %v492_v53  ;;  %v185_v43 = vsel %vm182_vm4, %v486_v15, %v487_v14  ;;  %v294_v15 = vld [vmem:[%s791_s3 + $0x18] sm:$0xff]  ;;  %s604_s3 = smov [#allocation2]  }
 0x123   :  { %330 = vmatpush.msra.mxu3 %v285_v57  ;;  %s406_s19 = sshll.u32 %s604_s3, 4  ;;  %s407_s19 = int_to_ptr.vmem [resolvable:$true] %s406_s19 }
 0x125   :  { %331 = vmatpush.msra.mxu3 %v284_v58 }
 0x127   :  { %v727_v60 = vpop.permute.xlu1 %509  ;;  %332 = vmatpush.msra.mxu3 %v283_v59  ;;  %v500_v61 = vpop.permute.xlu0 %499  ;;  %v160_v59 = vsel %vm157_vm6, %v496_v47, %v497_v44 }
 0x128   :  { %v502_v0 = vunpack.i.h.bf16 %v500_v61  ;;  %v501_v1 = vunpack.i.l.bf16 %v500_v61  ;;  %v512_v56 = vunpack.i.h.bf16 %v727_v60  ;;  %v511_v57 = vunpack.i.l.bf16 %v727_v60  ;;  %v565_v3 = vpop.permute.xlu2 %564 }
 0x129   :  { %v236_v61 = vsel %vm232_vm7, %v561_v49, %v562_v48  ;;  %v567_v10 = vunpack.i.h.bf16 %v565_v3 }
 0x12a   :  { %v211_v5 = vsel %vm207_vm3, %v501_v1, %v502_v0  ;;  %v159_v62 = vsel %vm157_vm6, %v511_v57, %v512_v56 }
 0x12b   :  { %302 = vmatpush.msra.mxu2 %v211_v5 }
 0x12d   :  { %303 = vmatpush.msra.mxu2 %v210_v8 }
 0x12f   :  { %v540_v17 = vpop.permute.xlu1 %539  ;;  %v505_v19 = vpop.permute.xlu0 %504  ;;  %304 = vmatpush.msra.mxu2 %v209_v12  ;;  %v566_v12 = vunpack.i.l.bf16 %v565_v3 }
 0x130   :  { %v542_v22 = vunpack.i.h.bf16 %v540_v17  ;;  %v541_v24 = vunpack.i.l.bf16 %v540_v17  ;;  %v507_v25 = vunpack.i.h.bf16 %v505_v19  ;;  %v506_v27 = vunpack.i.l.bf16 %v505_v19  ;;  %v363_v14 = vpop.permute.xlu2 %362 }
 0x131   :  { %305 = vmatpush.msra.mxu2 %v208_v20 }
 0x132   :  { %v261_v36 = vsel %vm257_vm5, %v541_v24, %v542_v22  ;;  %v260_v37 = vsel %vm257_vm5, %v506_v27, %v507_v25 }
 0x133   :  { %306 = vmatpush.msra.mxu2 %v186_v35  ;;  %333 = vmatpush.msra.mxu3 %v261_v36 }
 0x135   :  { %307 = vmatpush.msra.mxu2 %v185_v43  ;;  %334 = vmatpush.msra.mxu3 %v260_v37 }
 0x137   :  { %v545_v41 = vpop.permute.xlu1 %544  ;;  %v530_v50 = vpop.permute.xlu0 %529  ;;  %308 = vmatpush.msra.mxu2 %v184_v45  ;;  %335 = vmatpush.msra.mxu3 %v259_v46 }
 0x138   :  { %v547_v52 = vunpack.i.h.bf16 %v545_v41  ;;  %v546_v53 = vunpack.i.l.bf16 %v545_v41  ;;  %v532_v54 = vunpack.i.h.bf16 %v530_v50  ;;  %v531_v55 = vunpack.i.l.bf16 %v530_v50  ;;  %v384_v35 = vpop.permute.xlu2 %383 }
 0x139   :  { %309 = vmatpush.msra.mxu2 %v183_v51 }
 0x13a   :  { %v161_v38 = vsel %vm157_vm6, %v531_v55, %v532_v54  ;;  %v258_v58 = vsel %vm257_vm5, %v546_v53, %v547_v52 }
 0x13b   :  { %310 = vmatpush.msra.mxu2 %v161_v38  ;;  %336 = vmatpush.msra.mxu3 %v258_v58 }
 0x13d   :  { %311 = vmatpush.msra.mxu2 %v160_v59  ;;  %337 = vmatpush.msra.mxu3 %v236_v61 }
 0x13f   :  { %v535_v63 = vpop.permute.xlu0 %534  ;;  %312 = vmatpush.msra.mxu2 %v159_v62  ;;  %v555_v2 = vpop.permute.xlu1 %554 }
 0x140   :  { %v537_v0 = vunpack.i.h.bf16 %v535_v63  ;;  %v536_v1 = vunpack.i.l.bf16 %v535_v63  ;;  %v557_v5 = vunpack.i.h.bf16 %v555_v2  ;;  %v556_v6 = vunpack.i.l.bf16 %v555_v2 }
 0x142   :  { %v158_v60 = vsel %vm157_vm6, %v536_v1, %v537_v0  ;;  %v234_v21 = vsel %vm232_vm7, %v556_v6, %v557_v5 }
 0x143   :  { %313 = vmatpush.msra.mxu2 %v158_v60 }
 0x145   :  { %314 = vmatpush.msra.mxu2 %v131_v28 }
 0x147   :  { %v550_v4 = vpop.permute.xlu0 %549  ;;  %315 = vmatpush.msra.mxu2 %v129_v23  ;;  %v355_v23 = vpop.permute.xlu1 %354 }
 0x148   :  { %v552_v7 = vunpack.i.h.bf16 %v550_v4  ;;  %v551_v8 = vunpack.i.l.bf16 %v550_v4  ;;  %v361_v17 = vadd.f32 %v355_v23, %v699_v31 }
 0x149   :  { %316 = vmatpush.msra.mxu2 %v127_v18  ;;  %v233_v18 = vsel %vm232_vm7, %v566_v12, %v567_v10 }
 0x14a   :  { %v235_v26 = vsel %vm232_vm7, %v551_v8, %v552_v7 }
 0x14b   :  { %317 = vmatpush.msra.mxu2 %v125_v13  ;;  %338 = vmatpush.msra.mxu3 %v235_v26 }
 0x14c   :  { %318 = vmatmul.f32.vlgmr.msra.gmra.mxu2 %v291_v9 }
 0x14d   :  { %339 = vmatpush.msra.mxu3 %v234_v21 }
 0x14f   :  { %340 = vmatpush.msra.mxu3 %v233_v18  ;;  %v353_v28 = vpop.permute.xlu0 %352  ;;  %v375_v22 = vpop.permute.xlu1 %374 }
 0x150   :  { %434 = vmatmul.msk.f32.vlgmr.msra.gmra.mxu3 %vm295_vm8, %v292_v16  ;;  %v357_v13 = vsel %vm356_vm9, %v353_v28, %v355_v23 }
 0x151   :  { %v360_v19 = vadd.f32 %v357_v13, %v701_v32 }
 0x154   :  { %321 = vmatmul.f32.gmra.mxu2 %v293_v11 }
 0x157   :  { %v365_v20 = vpop.permute.xlu0 %364 }
 0x158   :  { %v366_v24 = vsel %vm157_vm6, %v363_v14, %v365_v20  ;;  %v370_v25 = vadd.f32 %v365_v20, %v361_v17  ;;  %435 = vmatmul.msk.f32.gmra.mxu3 %vm295_vm8, %v294_v15 }
 0x159   :  { %v369_v27 = vadd.f32 %v366_v24, %v360_v19 }
 0x15a   :  { %v378_v29 = vmul.f32 %v375_v22, %v370_v25 }
 0x15b   :  { %v377_v30 = vmul.f32 %v375_v22, %v369_v27 }
 0x15c   :  { %v380_v33 = vmax.f32 %v378_v29, 0.0 }
 0x15d   :  { %v379_v34 = vmax.f32 %v377_v30, 0.0 }
 0x15e   :  { %396 = vrot.lane.b32.xlu2 %v380_v33, %s603_s18 }
 0x15f   :  { %394 = vrot.lane.b32.xlu1 %v379_v34, %s603_s18  ;;  %v386_v36 = vpop.permute.xlu0 %385 }
 0x160   :  { %v387_v31 = vsel %vm207_vm3, %v384_v35, %v386_v36 }
 0x161   :  { %389 = vst [vmem:[#allocation2] sm:$0xff] %v387_v31 }
 0x1b8   :  { %v397_v39 = vpop.permute.xlu2 %396 }
 0x1cf   :  { %v319_v32 = vpop.f32.mrf.mxu2 }
 0x1d1   :  { %v395_v40 = vpop.permute.xlu1 %394 }
 0x1d2   :  { %v399_v42 = vsel %vm398_vm10, %v395_v40, %v397_v39 }
 0x1d3   :  { %401 = vst [vmem:[#allocation2 + $0x18] sm:$0xff] %v399_v42  ;;  %v342_v43 = vpop.f32.mrf.mxu3 }
 0x1d4   :  { %v343_v37 = vadd.f32 %v342_v43, %v319_v32 }
 0x1d6   :  { %v348_v44 = vmax.f32 %v343_v37, 0.0 }
 0x1d7   :  { %v322_v45 = vpop.f32.mrf.mxu2 }
 0x1d8   :  { %390 = vst [vmem:[#allocation2 + $0x8] sm:$0xff] %v348_v44 }
 0x1db   :  { %v345_v46 = vpop.f32.mrf.mxu3 }
 0x1dc   :  { %v346_v47 = vadd.f32 %v345_v46, %v322_v45 }
 0x1de   :  { %v349_v48 = vmax.f32 %v346_v47, 0.0 }
 0x1e0   :  { %391 = vst [vmem:[#allocation2 + $0x10] sm:$0xff] %v349_v48 }
 0x1e1   :  { %414 = dma.vmem_to_hbm [thread:$0]  %s407_s19, 512, %s409_s21, [#allocation3], %s605_s22, %s605_s22, %s606_s23  }
 0x1e2   :  { %593 = dma.done.wait [#allocation3], 512  }
 0x1e3   :  { %594 = vsyncadd [#allocation3], 4294966784 }
 0x1e4   :  { %419 = vsyncpa [#allocation3], 1 }

</bundles_post_ra>
